<compile_context>
chip_gen: v7x
topology: tpu7x:2x2x1
jax: 0.10.0
libtpu: 0.0.40
codegen_flags: <defaults>
</compile_context>

<pallas_src>
import functools
import math

import jax
import jax.numpy as jnp
from jax.experimental import pallas as pl
from jax.experimental.pallas import tpu as pltpu


def _round_up(x, m):
    return (x + m - 1) // m * m


def _norm(A, lambda_max):
    """L_hat = 2*(I - D^-1/2 A D^-1/2)/lambda_max - I (matches torch norm())."""
    n = A.shape[0]
    eye = jnp.eye(n, dtype=A.dtype)
    # NOTE: matches the PyTorch module verbatim (subtracts A[0,0] from the
    # whole diagonal), quirks included.
    A = A - A[0, 0] * eye
    D = A.sum(axis=1)
    D = jnp.where(D <= 1e-4, jnp.asarray(1e-4, A.dtype), D)
    diag = 1.0 / jnp.sqrt(D)
    A_wave = diag[:, None] * A * diag[None, :]
    L = eye - A_wave
    return 2.0 * L / lambda_max - eye


def _cheb_kernel(K, BCp, lhat_ref, x_ref, w_ref, o_ref, t_ref):
    """One output-column tile per grid step.

    lhat_ref: (Np, Np)         bf16 scaled Laplacian (constant block)
    x_ref:    (Np, BCp)        bf16 batch-folded features (constant block)
    w_ref:    (K*BCp, TILE_OP) bf16 fused weight, output-column tile j
    o_ref:    (Np, TILE_OP)    batch-folded output tile j (lane = b*Cout+o)
    t_ref:    (Np, K*BCp)      bf16 persistent scratch: staged Chebyshev bases
    """
    # Chebyshev recurrence: computed once (first tile), reused for all tiles.
    @pl.when(pl.program_id(0) == 0)
    def _():
        lhat = lhat_ref[...]                              # bf16 (Np, Np)
        tx_prev = x_ref[...]                              # bf16 (Np, BCp)
        t_ref[:, 0:BCp] = tx_prev
        if K > 1:
            # Tx_1 = L_hat @ X  (bf16 MXU inputs, f32 accumulation)
            tx_cur = jnp.dot(lhat, tx_prev,
                             preferred_element_type=jnp.float32
                             ).astype(jnp.bfloat16)
            t_ref[:, BCp:2 * BCp] = tx_cur
            # K is a static Python int -> unrolled at trace time.  Only the
            # rolling bf16 (prev, cur) pair stays live (no f32 carries).
            for k in range(2, K):
                nxt = (2.0 * jnp.dot(lhat, tx_cur,
                                     preferred_element_type=jnp.float32)
                       - tx_prev.astype(jnp.float32)).astype(jnp.bfloat16)
                t_ref[:, k * BCp:(k + 1) * BCp] = nxt
                tx_prev, tx_cur = tx_cur, nxt

    # Fused (Np, K*BCp) @ (K*BCp, TILE_OP) feature matmul for this output
    # tile; covers all K orders and all batches, lane-dense store.
    o_ref[...] = jnp.dot(t_ref[...], w_ref[...],
                         preferred_element_type=jnp.float32).astype(o_ref.dtype)


def _spec(shape, index_map, buffers=None):
    """BlockSpec helper; buffers=1 disables double buffering when supported."""
    if buffers is not None and hasattr(pl, "Buffered"):
        try:
            return pl.BlockSpec(shape, index_map,
                                pipeline_mode=pl.Buffered(buffers))
        except TypeError:
            pass  # pipeline_mode unavailable in this jax version -> default.
    return pl.BlockSpec(shape, index_map)


def cheb_conv(X, A, weight, lambda_max=None):
    """ChebConv forward. X: (B, N, Cin), A: (N, N), weight: (K, Cin, Cout)."""
    lam = 2.0 if lambda_max is None else lambda_max
    B, N, Cin = X.shape
    K, _, Cout = weight.shape

    # TODO(synk): keep L_hat in f32 (or a hi/lo bf16 split) inside the kernel
    # if large K / ill-conditioned Laplacians need tighter recurrence accuracy.
    L_hat = _norm(A.astype(jnp.float32), lam)

    # ---- layout plumbing (plain JAX, cheap) --------------------------------
    Np = _round_up(N, 16)              # bf16 sublane-friendly node dim
    BCp = _round_up(B * Cin, 128)      # lane width of the recurrence matmul
    Op = _round_up(B * Cout, 128)      # lane-dense output width
    # Output-column tile: largest of {512, 256, 128} dividing Op so the fused
    # weight DMA / output writeback pipeline under the feature matmul.
    if Op % 512 == 0:
        TILE_OP = 512
    elif Op % 256 == 0:
        TILE_OP = 256
    else:
        TILE_OP = 128
    num_op_tiles = Op // TILE_OP

    L_pad = jnp.zeros((Np, Np), jnp.float32).at[:N, :N].set(L_hat)
    L_pad = L_pad.astype(jnp.bfloat16)

    # Fold batch into the lane axis: (B, N, Cin) -> (N, B*Cin), zero-pad lanes.
    Xf = jnp.transpose(X, (1, 0, 2)).reshape(N, B * Cin).astype(jnp.float32)
    X_pad = jnp.zeros((Np, BCp), jnp.float32).at[:N, :B * Cin].set(Xf)
    X_pad = X_pad.astype(jnp.bfloat16)

    # Batch-block-diagonal fused weight:
    #   Wf[k*BCp + b*Cin + i, b*Cout + o] = weight[k, i, o]
    # TODO(synk): for B >= ~8 the block-diagonal fusion wastes Bx MXU FLOPs
    # and B^2 x weight memory; switch to a per-batch output-tile grid axis
    # with one shared (K*Cin, Cout) weight block instead.
    eyeB = jnp.eye(B, dtype=jnp.float32)
    Wbd = jnp.einsum('kio,bc->kbico', weight.astype(jnp.float32),
                     eyeB).reshape(K, B * Cin, B * Cout)
    W_pad = jnp.zeros((K, BCp, Op), jnp.float32)
    W_pad = W_pad.at[:, :B * Cin, :B * Cout].set(Wbd)
    W_pad = W_pad.reshape(K * BCp, Op).astype(jnp.bfloat16)

    # ---- VMEM budget (generation-aware) ------------------------------------
    out_bytes = jnp.dtype(X.dtype).itemsize
    est = (Np * Np * 2                      # L_hat       (single-buffered)
           + Np * BCp * 2                   # folded X    (single-buffered)
           + 2 * K * BCp * TILE_OP * 2      # W tile      (double-buffered)
           + 2 * Np * TILE_OP * out_bytes   # out tile    (double-buffered)
           + Np * K * BCp * 2               # staged Chebyshev bases (scratch)
           + 2 * 4 * Np * BCp               # live f32 recurrence temporaries
           + 4 * Np * TILE_OP)              # f32 matmul result before cast
    try:
        vmem_cap = int(pltpu.get_tpu_info().vmem_capacity_bytes)
    except Exception:
        vmem_cap = 64 << 20                 # conservative fallback
    vmem_limit = int(min(max(est + (8 << 20), 32 << 20),
                         int(0.85 * vmem_cap)))
    # TODO(synk): for very large N (bf16 L_hat approaching the VMEM budget)
    # stream L_hat row-tiles from HBM inside the kernel instead of holding it.

    out_folded = pl.pallas_call(
        functools.partial(_cheb_kernel, K, BCp),
        out_shape=jax.ShapeDtypeStruct((Np, Op), X.dtype),
        grid=(num_op_tiles,),
        in_specs=[
            _spec((Np, Np), lambda j: (0, 0), buffers=1),     # L_hat (const)
            _spec((Np, BCp), lambda j: (0, 0), buffers=1),    # folded X (const)
            _spec((K * BCp, TILE_OP), lambda j: (0, j)),      # fused W tile
        ],
        out_specs=_spec((Np, TILE_OP), lambda j: (0, j)),
        scratch_shapes=[pltpu.VMEM((Np, K * BCp), jnp.bfloat16)],
        compiler_params=pltpu.CompilerParams(
            # The recurrence runs only at j == 0 and its result is reused via
            # the persistent scratch -> the Op-tile axis must be sequential.
            # TODO(synk): on v7x, use both TensorCores by recomputing the
            # recurrence per core (or staging Tx via VMEM_SHARED) and marking
            # this axis "parallel".
            dimension_semantics=("arbitrary",),
            vmem_limit_bytes=vmem_limit,
        ),
    )(L_pad, X_pad, W_pad)

    # Unfold: (N, B*Cout) -> (B, N, Cout)
    out = out_folded[:N, :B * Cout].reshape(N, B, Cout)
    return jnp.transpose(out, (1, 0, 2))


def _cheb_conv_ref(X, A, weight, lambda_max=None):
    """Pure-JAX f32 reference mirroring the PyTorch forward (for validation)."""
    lam = 2.0 if lambda_max is None else lambda_max
    L_hat = _norm(A, lam)
    K = weight.shape[0]
    tx0 = X
    out = jnp.einsum('bni,io->bno', tx0, weight[0])
    if K > 1:
        tx1 = jnp.einsum('nm,bmi->bni', L_hat, X)
        out = out + jnp.einsum('bni,io->bno', tx1, weight[1])
        for k in range(2, K):
            tx2 = 2.0 * jnp.einsum('nm,bmi->bni', L_hat, tx1) - tx0
            out = out + jnp.einsum('bni,io->bno', tx2, weight[k])
            tx0, tx1 = tx1, tx2
    return out


if __name__ == "__main__":
    # Small, deterministic problem.
    B, N, Cin, Cout, K = 2, 16, 8, 32, 3

    key = jax.random.PRNGKey(0)
    kx, ka, kw = jax.random.split(key, 3)

    X = jax.random.normal(kx, (B, N, Cin), dtype=jnp.float32)

    # Symmetric non-negative adjacency with zero diagonal.
    A_raw = jax.random.uniform(ka, (N, N), dtype=jnp.float32)
    A = (A_raw + A_raw.T) * 0.5
    A = A * (1.0 - jnp.eye(N, dtype=jnp.float32))

    # Deterministic init mimicking reset_parameters(): U(-stdv, stdv),
    # stdv = 1/sqrt(out_channels).
    stdv = 1.0 / math.sqrt(Cout)
    weight = jax.random.uniform(kw, (K, Cin, Cout), dtype=jnp.float32,
                                minval=-stdv, maxval=stdv)

    out = cheb_conv(X, A, weight)
    out = jax.block_until_ready(out)

    ref = _cheb_conv_ref(X, A, weight)
    assert out.shape == (B, N, Cout), out.shape
    # bf16 MXU inputs (f32 accumulation) -> slightly looser tolerance vs the
    # pure-f32 reference.
    max_err = float(jnp.max(jnp.abs(out - ref)))
    assert jnp.allclose(out, ref, atol=5e-2, rtol=5e-2), max_err

    print("KERNEL_OK")
</pallas_src>

<mosaic_0001>
module attributes {stable_mosaic.version = 11 : i64} {
  func.func @_cheb_kernel(%arg0: i32, %arg1: memref<16x16xbf16, #tpu.memory_space<vmem>>, %arg2: memref<16x128xbf16, #tpu.memory_space<vmem>>, %arg3: memref<384x128xbf16, #tpu.memory_space<vmem>>, %arg4: memref<16x128xf32, #tpu.memory_space<vmem>>, %arg5: memref<16x384xbf16, #tpu.memory_space<vmem>>) attributes {dimension_semantics = [#tpu.dimension_semantics<arbitrary>], iteration_bounds = array<i64: 1>, scalar_prefetch = 0 : i64, scratch_operands = 1 : i64, tpu.core_type = #tpu.core_type<tc>, window_params = [{pipeline_mode = #tpu.pipeline_mode<synchronous>, transform_indices = @transform_0, window_bounds = array<i64: 16, 16>}, {pipeline_mode = #tpu.pipeline_mode<synchronous>, transform_indices = @transform_1, window_bounds = array<i64: 16, 128>}, {transform_indices = @transform_2, window_bounds = array<i64: 384, 128>}, {transform_indices = @transform_3, window_bounds = array<i64: 16, 128>}]} {
    %c0_i32 = arith.constant 0 : i32
    %0 = arith.cmpi eq, %arg0, %c0_i32 : i32
    %1 = arith.extui %0 : i1 to i32
    %c0_i32_0 = arith.constant 0 : i32
    %2 = arith.cmpi ne, %1, %c0_i32_0 : i32
    scf.if %2 {
      %c0_6 = arith.constant 0 : index
      %c0_7 = arith.constant 0 : index
      %7 = vector.load %arg1[%c0_6, %c0_7] : memref<16x16xbf16, #tpu.memory_space<vmem>>, vector<16x16xbf16>
      %c0_8 = arith.constant 0 : index
      %c0_9 = arith.constant 0 : index
      %8 = vector.load %arg2[%c0_8, %c0_9] : memref<16x128xbf16, #tpu.memory_space<vmem>>, vector<16x128xbf16>
      %c0_10 = arith.constant 0 : index
      %c0_11 = arith.constant 0 : index
      %9 = vector.load %arg5[%c0_10, %c0_11] : memref<16x384xbf16, #tpu.memory_space<vmem>>, vector<16x128xbf16>
      tpu.vector_store %arg5[%c0_10, %c0_11], %8 {strides = array<i32>} : memref<16x384xbf16, #tpu.memory_space<vmem>>, vector<16x128xbf16>,
      %cst_12 = arith.constant dense<0.000000e+00> : vector<16x128xf32>
      %10 = tpu.matmul %7, %8, %cst_12 {dimension_numbers = #tpu.dot_dimension_numbers<[1], [0], [0], [1], [0, 0, 1, 1], [], []>} : vector<16x16xbf16>, vector<16x128xbf16>, vector<16x128xf32> -> vector<16x128xf32>
      %11 = arith.truncf %10 : vector<16x128xf32> to vector<16x128xbf16>
      %c0_13 = arith.constant 0 : index
      %c128 = arith.constant 128 : index
      %12 = vector.load %arg5[%c0_13, %c128] : memref<16x384xbf16, #tpu.memory_space<vmem>>, vector<16x128xbf16>
      tpu.vector_store %arg5[%c0_13, %c128], %11 {strides = array<i32>} : memref<16x384xbf16, #tpu.memory_space<vmem>>, vector<16x128xbf16>,
      %cst_14 = arith.constant dense<0.000000e+00> : vector<16x128xf32>
      %13 = tpu.matmul %7, %11, %cst_14 {dimension_numbers = #tpu.dot_dimension_numbers<[1], [0], [0], [1], [0, 0, 1, 1], [], []>} : vector<16x16xbf16>, vector<16x128xbf16>, vector<16x128xf32> -> vector<16x128xf32>
      %cst_15 = arith.constant 2.000000e+00 : f32
      %14 = vector.broadcast %cst_15 : f32 to vector<16x128xf32>
      %15 = arith.mulf %14, %13 : vector<16x128xf32>
      %16 = arith.extf %8 : vector<16x128xbf16> to vector<16x128xf32>
      %17 = arith.subf %15, %16 : vector<16x128xf32>
      %18 = arith.truncf %17 : vector<16x128xf32> to vector<16x128xbf16>
      %c0_16 = arith.constant 0 : index
      %c256 = arith.constant 256 : index
      %19 = vector.load %arg5[%c0_16, %c256] : memref<16x384xbf16, #tpu.memory_space<vmem>>, vector<16x128xbf16>
      tpu.vector_store %arg5[%c0_16, %c256], %18 {strides = array<i32>} : memref<16x384xbf16, #tpu.memory_space<vmem>>, vector<16x128xbf16>,
    } else {
    }
    %c0 = arith.constant 0 : index
    %c0_1 = arith.constant 0 : index
    %3 = vector.load %arg5[%c0, %c0_1] : memref<16x384xbf16, #tpu.memory_space<vmem>>, vector<16x384xbf16>
    %c0_2 = arith.constant 0 : index
    %c0_3 = arith.constant 0 : index
    %4 = vector.load %arg3[%c0_2, %c0_3] : memref<384x128xbf16, #tpu.memory_space<vmem>>, vector<384x128xbf16>
    %cst = arith.constant dense<0.000000e+00> : vector<16x128xf32>
    %5 = tpu.matmul %3, %4, %cst {dimension_numbers = #tpu.dot_dimension_numbers<[1], [0], [0], [1], [0, 0, 1, 1], [], []>} : vector<16x384xbf16>, vector<384x128xbf16>, vector<16x128xf32> -> vector<16x128xf32>
    %c0_4 = arith.constant 0 : index
    %c0_5 = arith.constant 0 : index
    %6 = vector.load %arg4[%c0_4, %c0_5] : memref<16x128xf32, #tpu.memory_space<vmem>>, vector<16x128xf32>
    tpu.vector_store %arg4[%c0_4, %c0_5], %5 {strides = array<i32>} : memref<16x128xf32, #tpu.memory_space<vmem>>, vector<16x128xf32>,
    return
  }
  func.func @transform_0(%arg0: i32) -> (i32, i32) {
    %c0_i32 = arith.constant 0 : i32
    %c0_i32_0 = arith.constant 0 : i32
    %c0_i32_1 = arith.constant 0 : i32
    return %c0_i32, %c0_i32_0 : i32, i32
  }
  func.func @transform_1(%arg0: i32) -> (i32, i32) {
    %c0_i32 = arith.constant 0 : i32
    %c0_i32_0 = arith.constant 0 : i32
    %c0_i32_1 = arith.constant 0 : i32
    return %c0_i32, %c0_i32_0 : i32, i32
  }
  func.func @transform_2(%arg0: i32) -> (i32, i32) {
    %c0_i32 = arith.constant 0 : i32
    %c0_i32_0 = arith.constant 0 : i32
    return %c0_i32, %arg0 : i32, i32
  }
  func.func @transform_3(%arg0: i32) -> (i32, i32) {
    %c0_i32 = arith.constant 0 : i32
    %c0_i32_0 = arith.constant 0 : i32
    return %c0_i32, %arg0 : i32, i32
  }
}

</mosaic_0001>

<bundles_post_ra>
// kernel: tpu_custom_call.1
= control target key start
LH: loop header
LB: loop body
LE: loop exit
PB: predicated region body
PF: predicated region fallthrough
CT: control target
= control target key end

     0   :  { %8 = vsyncpa [#allocation4], 0  ;;  %s814_s0 = inlined_call_operand.hbm [shape: bf16[16,16], index: 0, kind: input, shape index: {}]   ;;  %s815_s1 = inlined_call_operand.hbm [shape: bf16[16,128], index: 1, kind: input, shape index: {}]   ;;  %s816_s2 = inlined_call_operand.hbm [shape: bf16[384,128], index: 2, kind: input, shape index: {}]   ;;  %s817_s3 = inlined_call_operand.hbm [shape: f32[16,128], index: 3, kind: output, shape index: {}]  }
   0x1   :  { %9 = vsyncpa [#allocation7], 0 }
   0x2   :  { %10 = vsyncpa [#allocation5], 0  ;;  %s696_s12 = smov [#allocation6]   ;;  %s697_s14 = smov [#allocation3]  }
   0x3   :  { %s28_s13 = sshll.u32 %s696_s12, 4  ;;  %s16_s15 = sshll.u32 %s697_s14, 4  ;;  %s29_s13 = int_to_ptr.vmem [resolvable:$true] %s28_s13  ;;  %s726_s15 = int_to_ptr.vmem [resolvable:$true] %s16_s15 }
   0x4   :  { %s602_s18 = scalar_lea.hbm %s815_s1, 128 }
   0x5   :  { %p603_p0 = scmp.ne.s32.totalorder %s815_s1, %s602_s18  ;;  %p606_p1 = scmp.lt.u32.totalorder %s602_s18, %s815_s1 }
   0x7   :  { %p608_p2 = pnand %p606_p1, %p603_p0 }
   0x9   :  { %611 = shalt.err (!%p608_p2)
}
   0xa   :  { %s612_s23 = scalar_lea.vmem %s29_s13, 128  ;;  %p617_p4 = scmp.lt.s32.totalorder %s29_s13, %s29_s13 }
   0xb   :  { %p613_p3 = scmp.ne.s32.totalorder %s29_s13, %s612_s23  ;;  %p618_p5 = scmp.lt.s32.totalorder %s612_s23, %s612_s23 }
   0xd   :  { %p619_p6 = por %p618_p5, %p617_p4 }
   0xf   :  { %p620_p7 = pnand %p619_p6, %p613_p3 }
  0x11   :  { %623 = shalt.err (!%p620_p7)
}
  0x12   :  { %s698_s24 = smov 64   ;;  %s699_s25 = smov 4  }
  0x13   :  { %34 = dma.hbm_to_vmem [thread:$0]  %s815_s1, 128, %s29_s13, [#allocation7], %s698_s24, %s698_s24, %s699_s25  }
  0x14   :  { %s624_s30 = scalar_lea.hbm %s814_s0, 128 }
  0x15   :  { %p625_p8 = scmp.ne.s32.totalorder %s814_s0, %s624_s30  ;;  %p628_p9 = scmp.lt.u32.totalorder %s624_s30, %s814_s0 }
  0x17   :  { %p630_p10 = pnand %p628_p9, %p625_p8 }
  0x19   :  { %633 = shalt.err (!%p630_p10)
}
  0x1a   :  { %s634_s8 = scalar_lea.vmem %s726_s15, 128  ;;  %p639_p12 = scmp.lt.s32.totalorder %s726_s15, %s726_s15 }
  0x1b   :  { %p635_p11 = scmp.ne.s32.totalorder %s726_s15, %s634_s8  ;;  %p640_p13 = scmp.lt.s32.totalorder %s634_s8, %s634_s8 }
  0x1d   :  { %p641_p0 = por %p640_p13, %p639_p12 }
  0x1f   :  { %p642_p1 = pnand %p641_p0, %p635_p11 }
  0x21   :  { %645 = shalt.err (!%p642_p1)
}
  0x22   :  { %22 = dma.hbm_to_vmem [thread:$0]  %s814_s0, 128, %s726_s15, [#allocation4], %s698_s24, %s698_s24, %s699_s25  }
  0x23   :  { %s700_s10 = smov [#allocation8]   ;;  %s646_s14 = scalar_lea.hbm %s816_s2, 3072 }
  0x24   :  { %s40_s11 = sshll.u32 %s700_s10, 4  ;;  %p647_p2 = scmp.ne.s32.totalorder %s816_s2, %s646_s14  ;;  %s41_s11 = int_to_ptr.vmem [resolvable:$true] %s40_s11 }
  0x25   :  { %p650_p3 = scmp.lt.u32.totalorder %s646_s14, %s816_s2 }
  0x27   :  { %p652_p4 = pnand %p650_p3, %p647_p2 }
  0x29   :  { %655 = shalt.err (!%p652_p4)
}
  0x2a   :  { %s656_s20 = scalar_lea.vmem %s41_s11, 3072  ;;  %p661_p6 = scmp.lt.s32.totalorder %s41_s11, %s41_s11 }
  0x2b   :  { %p657_p5 = scmp.ne.s32.totalorder %s41_s11, %s656_s20  ;;  %p662_p7 = scmp.lt.s32.totalorder %s656_s20, %s656_s20 }
  0x2d   :  { %p663_p8 = por %p662_p7, %p661_p6 }
  0x2f   :  { %p664_p9 = pnand %p663_p8, %p657_p5 }
  0x31   :  { %667 = shalt.err (!%p664_p9)
}
  0x32   :  { %46 = dma.hbm_to_vmem [thread:$0]  %s816_s2, 3072, %s41_s11, [#allocation7], %s698_s24, %s698_s24, %s699_s25  }
  0x33   :  { %690 = dma.done.wait [#allocation4], 128  }
  0x34   :  { %691 = vsyncadd [#allocation4], 4294967168 }
  0x35   :  { %692 = dma.done.wait [#allocation7], 3200  }
  0x36   :  { %693 = vsyncadd [#allocation7], 4294964096  ;;  %v701_v0 = vmov 0.0   ;;  %vm702_vm0 = vmmov 0   ;;  %v784_v1 = vld [vmem:[#allocation6] sm:$0xff]   ;;  %v576_v2 = vld [vmem:[#allocation3] sm:$0xff]  }
  0x37   :  { %533 = vmatprep.subr.bf16.mxu0 %v701_v0  ;;  %535 = vmatprep.mubr.msk.bf16.mxu0 %vm702_vm0, %v701_v0  ;;  %vm77_vm1 = vcmask 130048   ;;  %v577_v3 = vld [vmem:[#allocation8 + $0x40] sm:$0xff]   ;;  %v579_v5 = vld [vmem:[#allocation8 + $0x48] sm:$0xff]   ;;  %v582_v7 = vld [vmem:[#allocation8 + $0x50] sm:$0xff]   ;;  %v167_v32 = vunpack.c.l.bf16 %v784_v1  ;;  %v168_v34 = vunpack.c.h.bf16 %v784_v1  ;;  %s703_s2 = smov [#allocation9]  }
  0x38   :  { %539 = vmatprep.subr.bf16.mxu1 %v701_v0  ;;  %541 = vmatprep.mubr.msk.bf16.mxu1 %vm702_vm0, %v701_v0  ;;  %v578_v4 = vld [vmem:[#allocation8] sm:$0xff]   ;;  %v580_v6 = vld [vmem:[#allocation8 + $0x8] sm:$0xff]   ;;  %v583_v8 = vld [vmem:[#allocation8 + $0x10] sm:$0xff]   ;;  %s457_s21 = sshll.u32 %s703_s2, 4  ;;  %s458_s21 = int_to_ptr.vmem [resolvable:$true] %s457_s21 }
  0x39   :  { %534 = vmatpush3.bf16.msra.mxu0 %v784_v1  ;;  %v585_v9 = vld [vmem:[#allocation8 + $0x58] sm:$0xff]   ;;  %v588_v11 = vld [vmem:[#allocation8 + $0x60] sm:$0xff]   ;;  %v591_v13 = vld [vmem:[#allocation8 + $0x68] sm:$0xff]   ;;  %s668_s22 = scalar_lea.vmem %s458_s21, 256  ;;  %p673_p11 = scmp.lt.s32.totalorder %s458_s21, %s458_s21 }
  0x3a   :  { %502 = vmatprep.subr.bf16.mxu0 %v577_v3  ;;  %v586_v10 = vld [vmem:[#allocation8 + $0x18] sm:$0xff]   ;;  %v589_v12 = vld [vmem:[#allocation8 + $0x20] sm:$0xff]   ;;  %v592_v14 = vld [vmem:[#allocation8 + $0x28] sm:$0xff]   ;;  %p669_p10 = scmp.ne.s32.totalorder %s458_s21, %s668_s22  ;;  %p674_p12 = scmp.lt.s32.totalorder %s668_s22, %s668_s22 }
  0x3b   :  { %v594_v15 = vld [vmem:[#allocation8 + $0x70] sm:$0xff]   ;;  %v597_v17 = vld [vmem:[#allocation8 + $0x78] sm:$0xff]   ;;  %v581_v23 = vld [vmem:[#allocation8 + $0x80] sm:$0xff]  }
  0x3c   :  { %536 = vmatmul.mubr.msk.bf16.vlgmr.msra.gmra.mrb[0].mxu0 %vm77_vm1, %v576_v2  ;;  %v595_v16 = vld [vmem:[#allocation8 + $0x30] sm:$0xff]   ;;  %v584_v24 = vld [vmem:[#allocation8 + $0x88] sm:$0xff]   ;;  %v590_v26 = vld [vmem:[#allocation8 + $0x98] sm:$0xff]   ;;  %p675_p13 = por %p674_p12, %p673_p11 }
  0x3d   :  { %503 = vmatpush3.bf16.msra.mxu0 %v578_v4  ;;  %v587_v25 = vld [vmem:[#allocation8 + $0x90] sm:$0xff]   ;;  %v593_v27 = vld [vmem:[#allocation8 + $0xa0] sm:$0xff]   ;;  %v596_v28 = vld [vmem:[#allocation8 + $0xa8] sm:$0xff]  }
  0x3e   :  { %504 = vmatprep.subr.bf16.mxu0 %v579_v5  ;;  %v598_v29 = vld [vmem:[#allocation8 + $0x38] sm:$0xff]   ;;  %v599_v30 = vld [vmem:[#allocation8 + $0xb0] sm:$0xff]   ;;  %p676_p0 = pnand %p675_p13, %p669_p10 }
  0x3f   :  { %v600_v31 = vld [vmem:[#allocation8 + $0xb8] sm:$0xff]  }
  0x41   :  { %505 = vmatpush3.bf16.msra.mxu0 %v580_v6 }
  0x42   :  { %506 = vmatprep.subr.bf16.mxu0 %v582_v7 }
  0x45   :  { %507 = vmatpush3.bf16.msra.mxu0 %v583_v8 }
  0x46   :  { %508 = vmatprep.subr.bf16.mxu0 %v585_v9 }
  0x49   :  { %509 = vmatpush3.bf16.msra.mxu0 %v586_v10 }
  0x4a   :  { %510 = vmatprep.subr.bf16.mxu0 %v588_v11 }
  0x4d   :  { %511 = vmatpush3.bf16.msra.mxu0 %v589_v12 }
  0x4e   :  { %512 = vmatprep.subr.bf16.mxu0 %v591_v13 }
  0x51   :  { %513 = vmatpush3.bf16.msra.mxu0 %v592_v14 }
  0x52   :  { %514 = vmatprep.subr.bf16.mxu0 %v594_v15 }
  0x55   :  { %515 = vmatpush3.bf16.msra.mxu0 %v595_v16 }
  0x56   :  { %516 = vmatprep.subr.bf16.mxu0 %v597_v17 }
  0x59   :  { %517 = vmatpush3.bf16.msra.mxu0 %v598_v29 }
 0x10f   :  { %v115_v18 = vpop.f32.mrb[0].mxu0 }
 0x110   :  { %v537_v19 = vpop.f32.mrb[1].mxu0 }
 0x111   :  { %v118_v20 = vpop.f32.mrb[2].mxu0 }
 0x112   :  { %v122_v21 = vpack.c.bf16 %v118_v20, %v115_v18  ;;  %v538_v22 = vpop.f32.mrb[3].mxu0 }
 0x114   :  { %540 = vmatpush3.bf16.msra.mxu1 %v122_v21  ;;  %400 = vmatprep.mubr.bf16.mxu0 %v122_v21 }
 0x115   :  { %545 = vmatprep.subr.bf16.mxu1 %v701_v0  ;;  %401 = vmatmul.mubr.bf16.vlgmr.msra.gmra.mrb[4].mxu0 %v784_v1 }
 0x117   :  { %542 = vmatmul.mubr.msk.bf16.vlgmr.msra.gmra.mrb[0].mxu1 %vm77_vm1, %v576_v2 }
 0x118   :  { %546 = vmatpush3.bf16.msra.mxu1 %v581_v23  ;;  %561 = vmatprep.mubr.msk.bf16.mxu1 %vm702_vm0, %v701_v0 }
 0x119   :  { %547 = vmatprep.subr.bf16.mxu1 %v701_v0 }
 0x11c   :  { %548 = vmatpush3.bf16.msra.mxu1 %v584_v24 }
 0x11d   :  { %549 = vmatprep.subr.bf16.mxu1 %v701_v0 }
 0x120   :  { %550 = vmatpush3.bf16.msra.mxu1 %v587_v25 }
 0x121   :  { %551 = vmatprep.subr.bf16.mxu1 %v701_v0 }
 0x124   :  { %552 = vmatpush3.bf16.msra.mxu1 %v590_v26 }
 0x125   :  { %553 = vmatprep.subr.bf16.mxu1 %v701_v0 }
 0x128   :  { %554 = vmatpush3.bf16.msra.mxu1 %v593_v27 }
 0x129   :  { %555 = vmatprep.subr.bf16.mxu1 %v701_v0 }
 0x12c   :  { %556 = vmatpush3.bf16.msra.mxu1 %v596_v28 }
 0x12d   :  { %557 = vmatprep.subr.bf16.mxu1 %v701_v0 }
 0x130   :  { %558 = vmatpush3.bf16.msra.mxu1 %v599_v30 }
 0x131   :  { %559 = vmatprep.subr.bf16.mxu1 %v701_v0 }
 0x134   :  { %560 = vmatpush3.bf16.msra.mxu1 %v600_v31 }
 0x1e8   :  { %v518_v43 = vpop.f32.mrb[4].mxu0 }
 0x1e9   :  { %v519_v44 = vpop.f32.mrb[5].mxu0 }
 0x1ea   :  { %v158_v33 = vpop.f32.mrb[0].mxu1  ;;  %v520_v45 = vadd.f32 %v519_v44, %v518_v43  ;;  %v521_v46 = vpop.f32.mrb[6].mxu0 }
 0x1eb   :  { %v165_v35 = vmul.f32 2.0, %v158_v33  ;;  %v543_v36 = vpop.f32.mrb[1].mxu1  ;;  %v522_v47 = vpop.f32.mrb[7].mxu0 }
 0x1ec   :  { %v161_v37 = vpop.f32.mrb[2].mxu1  ;;  %v523_v48 = vadd.f32 %v522_v47, %v521_v46 }
 0x1ed   :  { %v169_v38 = vsub.f32 %v165_v35, %v167_v32  ;;  %v166_v39 = vmul.f32 2.0, %v161_v37  ;;  %v544_v40 = vpop.f32.mrb[3].mxu1 }
 0x1ef   :  { %v170_v41 = vsub.f32 %v166_v39, %v168_v34 }
 0x1f1   :  { %v171_v42 = vpack.c.bf16 %v170_v41, %v169_v38 }
 0x1f3   :  { %562 = vmatmul.mubr.bf16.vlgmr.msra.gmra.mrb[4].mxu1 %v171_v42 }
 0x2c6   :  { %v443_v49 = vpop.f32.mrb[4].mxu1 }
 0x2c7   :  { %v444_v50 = vadd.f32 %v520_v45, %v443_v49  ;;  %v563_v51 = vpop.f32.mrb[5].mxu1 }
 0x2c8   :  { %v446_v52 = vpop.f32.mrb[6].mxu1 }
 0x2c9   :  { %450 = vst [vmem:[#allocation9] sm:$0xff] %v444_v50  ;;  %v447_v53 = vadd.f32 %v523_v48, %v446_v52  ;;  %v564_v54 = vpop.f32.mrb[7].mxu1 }
 0x2cb   :  { %451 = vst [vmem:[#allocation9 + $0x8] sm:$0xff] %v447_v53 }
 0x2cc   :  { %679 = shalt.err (!%p676_p0)
}
 0x2cd   :  { %s680_s25 = scalar_lea.hbm %s817_s3, 256 }
 0x2ce   :  { %p681_p1 = scmp.ne.s32.totalorder %s817_s3, %s680_s25  ;;  %p684_p2 = scmp.lt.u32.totalorder %s680_s25, %s817_s3 }
 0x2d0   :  { %p686_p3 = pnand %p684_p2, %p681_p1 }
 0x2d2   :  { %689 = shalt.err (!%p686_p3)
}
 0x2d3   :  { %s704_s30 = smov 128   ;;  %s705_s4 = smov 8  }
 0x2d4   :  { %463 = dma.vmem_to_hbm [thread:$0]  %s458_s21, 256, %s817_s3, [#allocation5], %s704_s30, %s704_s30, %s705_s4  }
 0x2d5   :  { %694 = dma.done.wait [#allocation5], 256  }
 0x2d6   :  { %695 = vsyncadd [#allocation5], 4294967040 }
 0x2d7   :  { %467 = vsyncpa [#allocation4], 1 }
 0x2d8   :  { %468 = vsyncpa [#allocation7], 1 }
 0x2d9   :  { %469 = vsyncpa [#allocation5], 1 }

</bundles_post_ra>
